<compile_context>
chip_gen: v7x
topology: tpu7x:2x2x1
jax: 0.10.0
libtpu: 0.0.40
codegen_flags: <defaults>
</compile_context>

<pallas_src>
import functools

import jax
import jax.numpy as jnp
from jax.experimental import pallas as pl
from jax.experimental.pallas import tpu as pltpu


def _round_up(x, m):
    return ((x + m - 1) // m) * m


def _fcl_kernel(x_ref, w1_ref, b1_ref, w2_ref, b2_ref, o_ref, *,
                inv_d, inv_dm1, eps):
    # x_ref:  (TM, D)   f32   row tile (cast to bf16 in-register)
    # w1_ref: (D, Dp)   bf16  fc1 weight, pre-transposed, feature-padded
    # b1_ref: (1, Dp)   f32   fc1 bias (padded columns are zero)
    # w2_ref: (Dp, Op)  bf16  fc2 weight, pre-transposed, LN gamma folded in
    # b2_ref: (1, Op)   f32   fc2 bias with LN beta folded in
    # o_ref:  (TM, Op)  out_dtype
    x = x_ref[...].astype(jnp.bfloat16)

    # fc1 on the MXU: bf16 operands, fp32 accumulation.
    h = jnp.dot(x, w1_ref[...], preferred_element_type=jnp.float32)
    h = h + b1_ref[...]

    # LayerNorm statistics in fp32, single pass. Padded feature columns of h
    # are exactly zero, so plain lane sums already equal the valid-column sums.
    s1 = jnp.sum(h, axis=-1, keepdims=True)
    s2 = jnp.sum(h * h, axis=-1, keepdims=True)
    mean = s1 * inv_d
    var = jnp.maximum(s2 - s1 * mean, 0.0) * inv_dm1      # unbiased (ddof=1)
    # torch-style: eps is added to the (unbiased) std, not the variance.
    inv = pl.reciprocal(jnp.sqrt(var) + eps, approx=True)
    z = ((h - mean) * inv).astype(jnp.bfloat16)

    # fc2 on the MXU (gamma/beta already folded into w2/b2). Padded rows of
    # w2 are zero, so padded columns of z cannot leak into the output.
    out = jnp.dot(z, w2_ref[...], preferred_element_type=jnp.float32)
    o_ref[...] = (out + b2_ref[...]).astype(o_ref.dtype)


def prepare_fc_params(w1, b1, gamma, beta, w2, b2):
    """One-time weight prep -- hoist out of the hot path and cache the result.

    Torch nn.Linear layout: w1 (D, D), w2 (O, D) are (out, in); b1 (D,),
    b2 (O,); gamma/beta (D,) are the LayerNorm a_2 / b_2 parameters.
    """
    D = w1.shape[1]
    O = w2.shape[0]
    Dp = _round_up(D, 128)
    Op = _round_up(O, 128)
    f32, bf16 = jnp.float32, jnp.bfloat16

    w1_t = jnp.zeros((D, Dp), bf16).at[:, :D].set(
        jnp.asarray(w1, f32).T.astype(bf16))
    b1_p = jnp.zeros((1, Dp), f32).at[0, :D].set(jnp.asarray(b1, f32))

    # Fold the LayerNorm affine into fc2:
    #   (gamma*z + beta) @ w2^T + b2 == z @ (w2*gamma)^T + (b2 + w2 @ beta)
    w2f = jnp.asarray(w2, f32) * jnp.asarray(gamma, f32)[None, :]
    b2f = jnp.asarray(b2, f32) + jnp.asarray(w2, f32) @ jnp.asarray(beta, f32)
    w2_t = jnp.zeros((Dp, Op), bf16).at[:D, :O].set(w2f.T.astype(bf16))
    b2_p = jnp.zeros((1, Op), f32).at[0, :O].set(b2f)

    return {"w1_t": w1_t, "b1": b1_p, "w2_t": w2_t, "b2": b2_p,
            "d": D, "o": O}


def fully_connected_layers(x, params, *, eps=1e-6, block_rows=512,
                           out_dtype=None):
    """x: (B, S, D).  params: output of prepare_fc_params.
    Returns fc2(LayerNorm(fc1(x))) with shape (B, S, O)."""
    B, S, D = x.shape
    assert params["d"] == D
    O = params["o"]
    w1_t, b1_p, w2_t, b2_p = (params["w1_t"], params["b1"],
                              params["w2_t"], params["b2"])
    Dp = w1_t.shape[1]
    Op = w2_t.shape[1]
    N = B * S
    out_dtype = x.dtype if out_dtype is None else jnp.dtype(out_dtype)
    out_bytes = jnp.dtype(out_dtype).itemsize
    x_bytes = jnp.dtype(x.dtype).itemsize

    # ---- VMEM budgeting (generation-aware: v7x is 64 MiB/TC) --------------
    try:
        vmem_cap = int(pltpu.get_tpu_info().vmem_capacity_bytes)
    except Exception:
        vmem_cap = 64 * 1024 * 1024            # conservative fallback
    vmem_limit = int(vmem_cap * 3 // 4)        # scoped limit we request
    vmem_budget = int(vmem_cap * 0.55)         # target for our own estimate

    resident = (w1_t.size * 2 + w2_t.size * 2          # bf16, single-buffered
                + b1_p.size * 4 + b2_p.size * 4)

    def tile_vmem(tm):
        return (2 * tm * D * x_bytes        # double-buffered x tile
                + 2 * tm * Op * out_bytes   # double-buffered out tile
                + tm * Dp * 4               # h (fp32)
                + tm * Dp * 4               # centered / normalized (fp32)
                + tm * Dp * 2               # z (bf16)
                + tm * Op * 4)              # fp32 matmul result before cast

    # ---- Row tile: nearly-full last tile, multiple of 16, and >= 2 grid
    # steps whenever there is enough work (megacore sharding on v7x).
    n_chunks = max(1, pl.cdiv(N, block_rows))
    if n_chunks == 1 and N >= 32:
        n_chunks = 2
    TM = max(16, _round_up(pl.cdiv(N, n_chunks), 16))
    while TM > 16 and resident + tile_vmem(TM) > vmem_budget:
        TM = max(16, _round_up(TM // 2, 16))
    n_tiles = pl.cdiv(N, TM)   # ragged tail handled by Pallas block padding
    # TODO(synk): if `resident` alone exceeds the budget (very large D on
    # v7x), fc1 needs a K-tiled grid with an fp32 accumulator instead.

    kernel = functools.partial(
        _fcl_kernel,
        inv_d=1.0 / D,
        inv_dm1=1.0 / max(D - 1, 1),
        eps=eps)

    def make_specs(single_buffer_resident):
        kw = ({"pipeline_mode": pl.Buffered(1)}
              if single_buffer_resident else {})
        const = lambda i: (0, 0)
        in_specs = [
            pl.BlockSpec((TM, D), lambda i: (i, 0)),   # x rows (pipelined)
            pl.BlockSpec((D, Dp), const, **kw),        # w1 (resident)
            pl.BlockSpec((1, Dp), const, **kw),        # b1
            pl.BlockSpec((Dp, Op), const, **kw),       # w2 * gamma (resident)
            pl.BlockSpec((1, Op), const, **kw),        # b2 + w2 @ beta
        ]
        out_spec = pl.BlockSpec((TM, Op), lambda i: (i, 0))
        return in_specs, out_spec

    cost = pl.CostEstimate(
        flops=2 * N * (D * Dp + Dp * Op),
        transcendentals=2 * N,
        bytes_accessed=(N * D * x_bytes + w1_t.size * 2 + w2_t.size * 2
                        + N * Op * out_bytes))

    x2d = x.reshape(N, D)

    def run(single_buffer_resident):
        in_specs, out_spec = make_specs(single_buffer_resident)
        return pl.pallas_call(
            kernel,
            out_shape=jax.ShapeDtypeStruct((N, Op), out_dtype),
            grid=(n_tiles,),
            in_specs=in_specs,
            out_specs=out_spec,
            compiler_params=pltpu.CompilerParams(
                dimension_semantics=("parallel",),
                vmem_limit_bytes=vmem_limit),
            cost_estimate=cost,
        )(x2d, w1_t, b1_p, w2_t, b2_p)

    try:
        out2d = run(True)
    except Exception:
        # Fallback for jax versions without BlockSpec pipeline_mode support.
        out2d = run(False)

    if Op != O:
        out2d = out2d[:, :O]
    return out2d.reshape(B, S, O)


def _reference(x, w1, b1, gamma, beta, w2, b2, eps=1e-6):
    # Pure-JAX fp32 reference of the PyTorch module:
    #   fc2( a_2 * (h - mean) / (std_unbiased + eps) + b_2 ),  h = fc1(x)
    hi = jax.lax.Precision.HIGHEST
    h = jnp.einsum('bsd,od->bso', x, w1, precision=hi) + b1
    mean = h.mean(-1, keepdims=True)
    var = jnp.sum((h - mean) ** 2, axis=-1, keepdims=True) / (h.shape[-1] - 1)
    z = (h - mean) / (jnp.sqrt(var) + eps)
    y = gamma * z + beta
    return jnp.einsum('bsd,od->bso', y, w2, precision=hi) + b2


if __name__ == "__main__":
    key = jax.random.PRNGKey(0)

    def run_case(B, S, D, O):
        ks = jax.random.split(jax.random.fold_in(key, D * 1000 + O * 7 + B), 7)
        k_x, k_w1, k_b1, k_w2, k_b2, k_g, k_bt = ks
        x = jax.random.normal(k_x, (B, S, D), dtype=jnp.float32)
        # Torch nn.Linear layout: weight is (out, in).
        w1 = jax.random.normal(k_w1, (D, D), dtype=jnp.float32) * 0.1
        b1 = jax.random.normal(k_b1, (D,), dtype=jnp.float32) * 0.1
        w2 = jax.random.normal(k_w2, (O, D), dtype=jnp.float32) * 0.1
        b2 = jax.random.normal(k_b2, (O,), dtype=jnp.float32) * 0.1
        gamma = 1.0 + 0.1 * jax.random.normal(k_g, (D,), dtype=jnp.float32)
        beta = 0.1 * jax.random.normal(k_bt, (D,), dtype=jnp.float32)

        params = prepare_fc_params(w1, b1, gamma, beta, w2, b2)  # hoisted prep
        out = fully_connected_layers(x, params)
        jax.block_until_ready(out)

        ref = _reference(x, w1, b1, gamma, beta, w2, b2)
        assert out.shape == (B, S, O), out.shape
        err = float(jnp.max(jnp.abs(out - ref)))
        assert jnp.allclose(out, ref, atol=5e-2, rtol=5e-2), (
            f"mismatch for B={B},S={S},D={D},O={O}: max abs err {err}")

    # Lane-dense shapes (no feature-dim padding), single 16-row tile.
    run_case(B=2, S=8, D=256, O=128)
    # Non-128-multiple features (zero-padded weights; padded h columns == 0).
    run_case(B=2, S=8, D=32, O=16)
    # Ragged row count: N=45 -> two row tiles (second one partial) + padded O.
    run_case(B=5, S=9, D=128, O=64)

    print("KERNEL_OK")
</pallas_src>

<mosaic_0001>
module attributes {stable_mosaic.version = 11 : i64} {
  func.func @_fcl_kernel(%arg0: i32, %arg1: memref<16x256xf32, #tpu.memory_space<vmem>>, %arg2: memref<256x256xbf16, #tpu.memory_space<vmem>>, %arg3: memref<1x256xf32, #tpu.memory_space<vmem>>, %arg4: memref<256x128xbf16, #tpu.memory_space<vmem>>, %arg5: memref<1x128xf32, #tpu.memory_space<vmem>>, %arg6: memref<16x128xf32, #tpu.memory_space<vmem>>) attributes {dimension_semantics = [#tpu.dimension_semantics<parallel>], iteration_bounds = array<i64: 1>, scalar_prefetch = 0 : i64, scratch_operands = 0 : i64, tpu.core_type = #tpu.core_type<tc>, window_params = [{transform_indices = @transform_0, window_bounds = array<i64: 16, 256>}, {pipeline_mode = #tpu.pipeline_mode<synchronous>, transform_indices = @transform_1, window_bounds = array<i64: 256, 256>}, {pipeline_mode = #tpu.pipeline_mode<synchronous>, transform_indices = @transform_2, window_bounds = array<i64: 1, 256>}, {pipeline_mode = #tpu.pipeline_mode<synchronous>, transform_indices = @transform_3, window_bounds = array<i64: 256, 128>}, {pipeline_mode = #tpu.pipeline_mode<synchronous>, transform_indices = @transform_4, window_bounds = array<i64: 1, 128>}, {transform_indices = @transform_5, window_bounds = array<i64: 16, 128>}]} {
    %c0 = arith.constant 0 : index
    %c0_0 = arith.constant 0 : index
    %0 = vector.load %arg1[%c0, %c0_0] : memref<16x256xf32, #tpu.memory_space<vmem>>, vector<16x256xf32>
    %1 = arith.truncf %0 : vector<16x256xf32> to vector<16x256xbf16>
    %c0_1 = arith.constant 0 : index
    %c0_2 = arith.constant 0 : index
    %2 = vector.load %arg2[%c0_1, %c0_2] : memref<256x256xbf16, #tpu.memory_space<vmem>>, vector<256x256xbf16>
    %cst = arith.constant dense<0.000000e+00> : vector<16x256xf32>
    %3 = tpu.matmul %1, %2, %cst {dimension_numbers = #tpu.dot_dimension_numbers<[1], [0], [0], [1], [0, 0, 1, 1], [], []>} : vector<16x256xbf16>, vector<256x256xbf16>, vector<16x256xf32> -> vector<16x256xf32>
    %c0_3 = arith.constant 0 : index
    %c0_4 = arith.constant 0 : index
    %4 = vector.load %arg3[%c0_3, %c0_4] : memref<1x256xf32, #tpu.memory_space<vmem>>, vector<1x256xf32>
    %5 = vector.broadcast %4 : vector<1x256xf32> to vector<16x256xf32>
    %6 = arith.addf %3, %5 : vector<16x256xf32>
    %cst_5 = arith.constant dense<0.000000e+00> : vector<16xf32>
    %7 = vector.multi_reduction <add>, %6, %cst_5 [1] : vector<16x256xf32> to vector<16xf32>
    %8 = vector.shape_cast %7 : vector<16xf32> to vector<16x1xf32>
    %9 = arith.mulf %6, %6 : vector<16x256xf32>
    %cst_6 = arith.constant dense<0.000000e+00> : vector<16xf32>
    %10 = vector.multi_reduction <add>, %9, %cst_6 [1] : vector<16x256xf32> to vector<16xf32>
    %11 = vector.shape_cast %10 : vector<16xf32> to vector<16x1xf32>
    %cst_7 = arith.constant 3.906250e-03 : f32
    %12 = vector.broadcast %cst_7 : f32 to vector<16x1xf32>
    %13 = arith.mulf %8, %12 : vector<16x1xf32>
    %14 = arith.mulf %8, %13 : vector<16x1xf32>
    %15 = arith.subf %11, %14 : vector<16x1xf32>
    %cst_8 = arith.constant 0.000000e+00 : f32
    %16 = vector.broadcast %cst_8 : f32 to vector<16x1xf32>
    %17 = arith.maximumf %15, %16 : vector<16x1xf32>
    %cst_9 = arith.constant 0.00392156886 : f32
    %18 = vector.broadcast %cst_9 : f32 to vector<16x1xf32>
    %19 = arith.mulf %17, %18 : vector<16x1xf32>
    %20 = math.sqrt %19 : vector<16x1xf32>
    %cst_10 = arith.constant 9.99999997E-7 : f32
    %21 = vector.broadcast %cst_10 : f32 to vector<16x1xf32>
    %22 = arith.addf %20, %21 : vector<16x1xf32>
    %23 = tpu.reciprocal %22 {approx = true} : vector<16x1xf32> -> vector<16x1xf32>
    %24 = vector.broadcast %13 : vector<16x1xf32> to vector<16x256xf32>
    %25 = arith.subf %6, %24 : vector<16x256xf32>
    %26 = vector.broadcast %23 : vector<16x1xf32> to vector<16x256xf32>
    %27 = arith.mulf %25, %26 : vector<16x256xf32>
    %28 = arith.truncf %27 : vector<16x256xf32> to vector<16x256xbf16>
    %c0_11 = arith.constant 0 : index
    %c0_12 = arith.constant 0 : index
    %29 = vector.load %arg4[%c0_11, %c0_12] : memref<256x128xbf16, #tpu.memory_space<vmem>>, vector<256x128xbf16>
    %cst_13 = arith.constant dense<0.000000e+00> : vector<16x128xf32>
    %30 = tpu.matmul %28, %29, %cst_13 {dimension_numbers = #tpu.dot_dimension_numbers<[1], [0], [0], [1], [0, 0, 1, 1], [], []>} : vector<16x256xbf16>, vector<256x128xbf16>, vector<16x128xf32> -> vector<16x128xf32>
    %c0_14 = arith.constant 0 : index
    %c0_15 = arith.constant 0 : index
    %31 = vector.load %arg5[%c0_14, %c0_15] : memref<1x128xf32, #tpu.memory_space<vmem>>, vector<1x128xf32>
    %32 = vector.broadcast %31 : vector<1x128xf32> to vector<16x128xf32>
    %33 = arith.addf %30, %32 : vector<16x128xf32>
    %c0_16 = arith.constant 0 : index
    %c0_17 = arith.constant 0 : index
    %34 = vector.load %arg6[%c0_16, %c0_17] : memref<16x128xf32, #tpu.memory_space<vmem>>, vector<16x128xf32>
    tpu.vector_store %arg6[%c0_16, %c0_17], %33 {strides = array<i32>} : memref<16x128xf32, #tpu.memory_space<vmem>>, vector<16x128xf32>,
    return
  }
  func.func @transform_0(%arg0: i32) -> (i32, i32) {
    %c0_i32 = arith.constant 0 : i32
    %c0_i32_0 = arith.constant 0 : i32
    return %arg0, %c0_i32 : i32, i32
  }
  func.func @transform_1(%arg0: i32) -> (i32, i32) {
    %c0_i32 = arith.constant 0 : i32
    %c0_i32_0 = arith.constant 0 : i32
    %c0_i32_1 = arith.constant 0 : i32
    return %c0_i32, %c0_i32_0 : i32, i32
  }
  func.func @transform_2(%arg0: i32) -> (i32, i32) {
    %c0_i32 = arith.constant 0 : i32
    %c0_i32_0 = arith.constant 0 : i32
    %c0_i32_1 = arith.constant 0 : i32
    return %c0_i32, %c0_i32_0 : i32, i32
  }
  func.func @transform_3(%arg0: i32) -> (i32, i32) {
    %c0_i32 = arith.constant 0 : i32
    %c0_i32_0 = arith.constant 0 : i32
    %c0_i32_1 = arith.constant 0 : i32
    return %c0_i32, %c0_i32_0 : i32, i32
  }
  func.func @transform_4(%arg0: i32) -> (i32, i32) {
    %c0_i32 = arith.constant 0 : i32
    %c0_i32_0 = arith.constant 0 : i32
    %c0_i32_1 = arith.constant 0 : i32
    return %c0_i32, %c0_i32_0 : i32, i32
  }
  func.func @transform_5(%arg0: i32) -> (i32, i32) {
    %c0_i32 = arith.constant 0 : i32
    %c0_i32_0 = arith.constant 0 : i32
    return %arg0, %c0_i32 : i32, i32
  }
}

module attributes {stable_mosaic.version = 11 : i64} {
  func.func @_fcl_kernel(%arg0: i32, %arg1: memref<16x256xf32, #tpu.memory_space<vmem>>, %arg2: memref<256x256xbf16, #tpu.memory_space<vmem>>, %arg3: memref<1x256xf32, #tpu.memory_space<vmem>>, %arg4: memref<256x128xbf16, #tpu.memory_space<vmem>>, %arg5: memref<1x128xf32, #tpu.memory_space<vmem>>, %arg6: memref<16x128xf32, #tpu.memory_space<vmem>>) attributes {dimension_semantics = [#tpu.dimension_semantics<parallel>], iteration_bounds = array<i64: 1>, scalar_prefetch = 0 : i64, scratch_operands = 0 : i64, tpu.core_type = #tpu.core_type<tc>, window_params = [{transform_indices = @transform_0, window_bounds = array<i64: 16, 256>}, {pipeline_mode = #tpu.pipeline_mode<synchronous>, transform_indices = @transform_1, window_bounds = array<i64: 256, 256>}, {pipeline_mode = #tpu.pipeline_mode<synchronous>, transform_indices = @transform_2, window_bounds = array<i64: 1, 256>}, {pipeline_mode = #tpu.pipeline_mode<synchronous>, transform_indices = @transform_3, window_bounds = array<i64: 256, 128>}, {pipeline_mode = #tpu.pipeline_mode<synchronous>, transform_indices = @transform_4, window_bounds = array<i64: 1, 128>}, {transform_indices = @transform_5, window_bounds = array<i64: 16, 128>}]} {
    %c0 = arith.constant 0 : index
    %c0_0 = arith.constant 0 : index
    %0 = vector.load %arg1[%c0, %c0_0] : memref<16x256xf32, #tpu.memory_space<vmem>>, vector<16x256xf32>
    %1 = arith.truncf %0 : vector<16x256xf32> to vector<16x256xbf16>
    %c0_1 = arith.constant 0 : index
    %c0_2 = arith.constant 0 : index
    %2 = vector.load %arg2[%c0_1, %c0_2] : memref<256x256xbf16, #tpu.memory_space<vmem>>, vector<256x256xbf16>
    %cst = arith.constant dense<0.000000e+00> : vector<16x256xf32>
    %3 = tpu.matmul %1, %2, %cst {dimension_numbers = #tpu.dot_dimension_numbers<[1], [0], [0], [1], [0, 0, 1, 1], [], []>} : vector<16x256xbf16>, vector<256x256xbf16>, vector<16x256xf32> -> vector<16x256xf32>
    %c0_3 = arith.constant 0 : index
    %c0_4 = arith.constant 0 : index
    %4 = vector.load %arg3[%c0_3, %c0_4] : memref<1x256xf32, #tpu.memory_space<vmem>>, vector<1x256xf32>
    %5 = vector.broadcast %4 : vector<1x256xf32> to vector<16x256xf32>
    %6 = arith.addf %3, %5 : vector<16x256xf32>
    %cst_5 = arith.constant dense<0.000000e+00> : vector<16xf32>
    %7 = vector.multi_reduction <add>, %6, %cst_5 [1] : vector<16x256xf32> to vector<16xf32>
    %8 = vector.shape_cast %7 : vector<16xf32> to vector<16x1xf32>
    %9 = arith.mulf %6, %6 : vector<16x256xf32>
    %cst_6 = arith.constant dense<0.000000e+00> : vector<16xf32>
    %10 = vector.multi_reduction <add>, %9, %cst_6 [1] : vector<16x256xf32> to vector<16xf32>
    %11 = vector.shape_cast %10 : vector<16xf32> to vector<16x1xf32>
    %cst_7 = arith.constant 3.906250e-03 : f32
    %12 = vector.broadcast %cst_7 : f32 to vector<16x1xf32>
    %13 = arith.mulf %8, %12 : vector<16x1xf32>
    %14 = arith.mulf %8, %13 : vector<16x1xf32>
    %15 = arith.subf %11, %14 : vector<16x1xf32>
    %cst_8 = arith.constant 0.000000e+00 : f32
    %16 = vector.broadcast %cst_8 : f32 to vector<16x1xf32>
    %17 = arith.maximumf %15, %16 : vector<16x1xf32>
    %cst_9 = arith.constant 0.00392156886 : f32
    %18 = vector.broadcast %cst_9 : f32 to vector<16x1xf32>
    %19 = arith.mulf %17, %18 : vector<16x1xf32>
    %20 = math.sqrt %19 : vector<16x1xf32>
    %cst_10 = arith.constant 9.99999997E-7 : f32
    %21 = vector.broadcast %cst_10 : f32 to vector<16x1xf32>
    %22 = arith.addf %20, %21 : vector<16x1xf32>
    %23 = tpu.reciprocal %22 {approx = true} : vector<16x1xf32> -> vector<16x1xf32>
    %24 = vector.broadcast %13 : vector<16x1xf32> to vector<16x256xf32>
    %25 = arith.subf %6, %24 : vector<16x256xf32>
    %26 = vector.broadcast %23 : vector<16x1xf32> to vector<16x256xf32>
    %27 = arith.mulf %25, %26 : vector<16x256xf32>
    %28 = arith.truncf %27 : vector<16x256xf32> to vector<16x256xbf16>
    %c0_11 = arith.constant 0 : index
    %c0_12 = arith.constant 0 : index
    %29 = vector.load %arg4[%c0_11, %c0_12] : memref<256x128xbf16, #tpu.memory_space<vmem>>, vector<256x128xbf16>
    %cst_13 = arith.constant dense<0.000000e+00> : vector<16x128xf32>
    %30 = tpu.matmul %28, %29, %cst_13 {dimension_numbers = #tpu.dot_dimension_numbers<[1], [0], [0], [1], [0, 0, 1, 1], [], []>} : vector<16x256xbf16>, vector<256x128xbf16>, vector<16x128xf32> -> vector<16x128xf32>
    %c0_14 = arith.constant 0 : index
    %c0_15 = arith.constant 0 : index
    %31 = vector.load %arg5[%c0_14, %c0_15] : memref<1x128xf32, #tpu.memory_space<vmem>>, vector<1x128xf32>
    %32 = vector.broadcast %31 : vector<1x128xf32> to vector<16x128xf32>
    %33 = arith.addf %30, %32 : vector<16x128xf32>
    %c0_16 = arith.constant 0 : index
    %c0_17 = arith.constant 0 : index
    %34 = vector.load %arg6[%c0_16, %c0_17] : memref<16x128xf32, #tpu.memory_space<vmem>>, vector<16x128xf32>
    tpu.vector_store %arg6[%c0_16, %c0_17], %33 {strides = array<i32>} : memref<16x128xf32, #tpu.memory_space<vmem>>, vector<16x128xf32>,
    return
  }
  func.func @transform_0(%arg0: i32) -> (i32, i32) {
    %c0_i32 = arith.constant 0 : i32
    %c0_i32_0 = arith.constant 0 : i32
    return %arg0, %c0_i32 : i32, i32
  }
  func.func @transform_1(%arg0: i32) -> (i32, i32) {
    %c0_i32 = arith.constant 0 : i32
    %c0_i32_0 = arith.constant 0 : i32
    %c0_i32_1 = arith.constant 0 : i32
    return %c0_i32, %c0_i32_0 : i32, i32
  }
  func.func @transform_2(%arg0: i32) -> (i32, i32) {
    %c0_i32 = arith.constant 0 : i32
    %c0_i32_0 = arith.constant 0 : i32
    %c0_i32_1 = arith.constant 0 : i32
    return %c0_i32, %c0_i32_0 : i32, i32
  }
  func.func @transform_3(%arg0: i32) -> (i32, i32) {
    %c0_i32 = arith.constant 0 : i32
    %c0_i32_0 = arith.constant 0 : i32
    %c0_i32_1 = arith.constant 0 : i32
    return %c0_i32, %c0_i32_0 : i32, i32
  }
  func.func @transform_4(%arg0: i32) -> (i32, i32) {
    %c0_i32 = arith.constant 0 : i32
    %c0_i32_0 = arith.constant 0 : i32
    %c0_i32_1 = arith.constant 0 : i32
    return %c0_i32, %c0_i32_0 : i32, i32
  }
  func.func @transform_5(%arg0: i32) -> (i32, i32) {
    %c0_i32 = arith.constant 0 : i32
    %c0_i32_0 = arith.constant 0 : i32
    return %arg0, %c0_i32 : i32, i32
  }
}

</mosaic_0001>

<bundles_post_ra>
// kernel: tpu_custom_call.1
= control target key start
LH: loop header
LB: loop body
LE: loop exit
PB: predicated region body
PF: predicated region fallthrough
CT: control target
= control target key end

     0   :  { %10 = vsyncpa [#allocation3], 0  ;;  %s937_s0 = inlined_call_operand.hbm [shape: f32[16,256], index: 0, kind: input, shape index: {}]   ;;  %s938_s1 = inlined_call_operand.hbm [shape: bf16[256,256], index: 1, kind: input, shape index: {}]   ;;  %s939_s2 = inlined_call_operand.vmem [shape: f32[1,256], index: 2, kind: input, shape index: {}]   ;;  %s940_s3 = inlined_call_operand.hbm [shape: bf16[256,128], index: 3, kind: input, shape index: {}]   ;;  %s941_s4 = inlined_call_operand.vmem [shape: f32[1,128], index: 4, kind: input, shape index: {}]   ;;  %s942_s5 = inlined_call_operand.hbm [shape: f32[16,128], index: 5, kind: output, shape index: {}]  }
   0x1   :  { %11 = vsyncpa [#allocation6], 0 }
   0x2   :  { %12 = vsyncpa [#allocation4], 0  ;;  %s813_s18 = smov [#allocation5]   ;;  %s719_s22 = scalar_lea.hbm %s938_s1, 4096 }
   0x3   :  { %s30_s19 = sshll.u32 %s813_s18, 4  ;;  %p720_p0 = scmp.ne.s32.totalorder %s938_s1, %s719_s22  ;;  %s31_s19 = int_to_ptr.vmem [resolvable:$true] %s30_s19 }
   0x4   :  { %p723_p1 = scmp.lt.u32.totalorder %s719_s22, %s938_s1 }
   0x6   :  { %p725_p2 = pnand %p723_p1, %p720_p0 }
   0x8   :  { %728 = shalt.err (!%p725_p2)
}
   0x9   :  { %s729_s27 = scalar_lea.vmem %s31_s19, 4096  ;;  %p734_p4 = scmp.lt.s32.totalorder %s31_s19, %s31_s19 }
   0xa   :  { %p730_p3 = scmp.ne.s32.totalorder %s31_s19, %s729_s27  ;;  %p735_p5 = scmp.lt.s32.totalorder %s729_s27, %s729_s27 }
   0xc   :  { %p736_p6 = por %p735_p5, %p734_p4 }
   0xe   :  { %p737_p7 = pnand %p736_p6, %p730_p3 }
  0x10   :  { %740 = shalt.err (!%p737_p7)
}
  0x11   :  { %s814_s28 = smov 128   ;;  %s815_s29 = smov 8  }
  0x12   :  { %36 = dma.hbm_to_vmem [thread:$0]  %s938_s1, 4096, %s31_s19, [#allocation6], %s814_s28, %s814_s28, %s815_s29  }
  0x13   :  { %s816_s7 = smov [#allocation2]   ;;  %s741_s11 = scalar_lea.hbm %s937_s0, 512 }
  0x14   :  { %s18_s8 = sshll.u32 %s816_s7, 4  ;;  %p742_p8 = scmp.ne.s32.totalorder %s937_s0, %s741_s11  ;;  %s19_s8 = int_to_ptr.vmem [resolvable:$true] %s18_s8 }
  0x15   :  { %p745_p9 = scmp.lt.u32.totalorder %s741_s11, %s937_s0 }
  0x17   :  { %p747_p10 = pnand %p745_p9, %p742_p8 }
  0x19   :  { %750 = shalt.err (!%p747_p10)
}
  0x1a   :  { %s751_s16 = scalar_lea.vmem %s19_s8, 512  ;;  %p756_p12 = scmp.lt.s32.totalorder %s19_s8, %s19_s8 }
  0x1b   :  { %p752_p11 = scmp.ne.s32.totalorder %s19_s8, %s751_s16  ;;  %p757_p13 = scmp.lt.s32.totalorder %s751_s16, %s751_s16 }
  0x1d   :  { %p758_p0 = por %p757_p13, %p756_p12 }
  0x1f   :  { %p759_p1 = pnand %p758_p0, %p752_p11 }
  0x21   :  { %762 = shalt.err (!%p759_p1)
}
  0x22   :  { %s817_s1 = smov 256   ;;  %s818_s17 = smov 16  }
  0x23   :  { %24 = dma.hbm_to_vmem [thread:$0]  %s937_s0, 512, %s19_s8, [#allocation3], %s817_s1, %s817_s1, %s818_s17  }
  0x24   :  { %s819_s20 = smov [#allocation7]   ;;  %s763_s24 = scalar_lea.hbm %s940_s3, 2048 }
  0x25   :  { %s44_s21 = sshll.u32 %s819_s20, 4  ;;  %p764_p2 = scmp.ne.s32.totalorder %s940_s3, %s763_s24  ;;  %s45_s21 = int_to_ptr.vmem [resolvable:$true] %s44_s21 }
  0x26   :  { %p767_p3 = scmp.lt.u32.totalorder %s763_s24, %s940_s3 }
  0x28   :  { %p769_p4 = pnand %p767_p3, %p764_p2 }
  0x2a   :  { %772 = shalt.err (!%p769_p4)
}
  0x2b   :  { %s773_s6 = scalar_lea.vmem %s45_s21, 2048  ;;  %p778_p6 = scmp.lt.s32.totalorder %s45_s21, %s45_s21 }
  0x2c   :  { %p774_p5 = scmp.ne.s32.totalorder %s45_s21, %s773_s6  ;;  %p779_p7 = scmp.lt.s32.totalorder %s773_s6, %s773_s6 }
  0x2e   :  { %p780_p8 = por %p779_p7, %p778_p6 }
  0x30   :  { %p781_p9 = pnand %p780_p8, %p774_p5 }
  0x32   :  { %784 = shalt.err (!%p781_p9)
}
  0x33   :  { %s820_s0 = smov 64   ;;  %s821_s7 = smov 4  }
  0x34   :  { %50 = dma.hbm_to_vmem [thread:$0]  %s940_s3, 2048, %s45_s21, [#allocation6], %s820_s0, %s820_s0, %s821_s7  }
  0x35   :  { %807 = dma.done.wait [#allocation3], 512  }
  0x36   :  { %808 = vsyncadd [#allocation3], 4294966784 }
  0x37   :  { %809 = dma.done.wait [#allocation6], 6144  }
  0x38   :  { %810 = vsyncadd [#allocation6], 4294961152  ;;  %v647_v0 = vld [vmem:[#allocation5 + $0x4] ss:$8 sps:$4 sm:$0xff]   ;;  %v649_v1 = vld [vmem:[#allocation5] ss:$8 sps:$4 sm:$0xff]   ;;  %v103_v38 = vlaneseq }
  0x39   :  { %273 = vmatprep.subr.bf16.mxu0 %v647_v0  ;;  %v650_v2 = vld [vmem:[#allocation5 + $0x14] ss:$8 sps:$4 sm:$0xff]   ;;  %v652_v3 = vld [vmem:[#allocation5 + $0x10] ss:$8 sps:$4 sm:$0xff]   ;;  %v653_v4 = vld [vmem:[#allocation5 + $0x24] ss:$8 sps:$4 sm:$0xff]  }
  0x3a   :  { %274 = vmatpush1.bf16.msra.mxu0 %v649_v1  ;;  %v655_v5 = vld [vmem:[#allocation5 + $0x20] ss:$8 sps:$4 sm:$0xff]   ;;  %v656_v6 = vld [vmem:[#allocation5 + $0x34] ss:$8 sps:$4 sm:$0xff]   ;;  %v658_v7 = vld [vmem:[#allocation5 + $0x30] ss:$8 sps:$4 sm:$0xff]  }
  0x3b   :  { %275 = vmatprep.subr.bf16.mxu0 %v650_v2  ;;  %v659_v8 = vld [vmem:[#allocation5 + $0x44] ss:$8 sps:$4 sm:$0xff]   ;;  %v661_v9 = vld [vmem:[#allocation5 + $0x40] ss:$8 sps:$4 sm:$0xff]   ;;  %v662_v10 = vld [vmem:[#allocation5 + $0x54] ss:$8 sps:$4 sm:$0xff]  }
  0x3c   :  { %v664_v11 = vld [vmem:[#allocation5 + $0x50] ss:$8 sps:$4 sm:$0xff]   ;;  %v665_v12 = vld [vmem:[#allocation5 + $0x64] ss:$8 sps:$4 sm:$0xff]   ;;  %v667_v15 = vld [vmem:[#allocation5 + $0x60] ss:$8 sps:$4 sm:$0xff]  }
  0x3d   :  { %v64_v13 = vld [vmem:[#allocation2 + $0x8] sm:$0xff]  ;;  %v66_v14 = vld [vmem:[#allocation2 + $0x18] sm:$0xff]  ;;  %v63_v35 = vld [vmem:[#allocation2] sm:$0xff]  ;;  %v104_v39 = vshrl.u32 %v103_v38, 7  ;;  %s822_s12 = smov [#allocation8]  }
  0x3e   :  { %276 = vmatpush1.bf16.msra.mxu0 %v652_v3  ;;  %v668_v16 = vld [vmem:[#allocation5 + $0x74] ss:$8 sps:$4 sm:$0xff]   ;;  %v68_v17 = vpack.c.bf16 %v66_v14, %v64_v13  ;;  %v670_v18 = vld [vmem:[#allocation5 + $0x70] ss:$8 sps:$4 sm:$0xff]   ;;  %v671_v19 = vld [vmem:[#allocation5 + $0x84] ss:$8 sps:$4 sm:$0xff]  }
  0x3f   :  { %277 = vmatprep.subr.bf16.mxu0 %v653_v4  ;;  %v673_v20 = vld [vmem:[#allocation5 + $0x80] ss:$8 sps:$4 sm:$0xff]   ;;  %v674_v21 = vld [vmem:[#allocation5 + $0x94] ss:$8 sps:$4 sm:$0xff]   ;;  %v676_v22 = vld [vmem:[#allocation5 + $0x90] ss:$8 sps:$4 sm:$0xff]  }
  0x40   :  { %305 = vmatprep.mubr.bf16.mxu0 %v68_v17  ;;  %v677_v23 = vld [vmem:[#allocation5 + $0xa4] ss:$8 sps:$4 sm:$0xff]   ;;  %v679_v24 = vld [vmem:[#allocation5 + $0xa0] ss:$8 sps:$4 sm:$0xff]   ;;  %v680_v25 = vld [vmem:[#allocation5 + $0xb4] ss:$8 sps:$4 sm:$0xff]  }
  0x41   :  { %v682_v26 = vld [vmem:[#allocation5 + $0xb0] ss:$8 sps:$4 sm:$0xff]   ;;  %v683_v27 = vld [vmem:[#allocation5 + $0xc4] ss:$8 sps:$4 sm:$0xff]   ;;  %v685_v28 = vld [vmem:[#allocation5 + $0xc0] ss:$8 sps:$4 sm:$0xff]  }
  0x42   :  { %278 = vmatpush1.bf16.msra.mxu0 %v655_v5  ;;  %v686_v29 = vld [vmem:[#allocation5 + $0xd4] ss:$8 sps:$4 sm:$0xff]   ;;  %v688_v30 = vld [vmem:[#allocation5 + $0xd0] ss:$8 sps:$4 sm:$0xff]   ;;  %v689_v31 = vld [vmem:[#allocation5 + $0xe4] ss:$8 sps:$4 sm:$0xff]  }
  0x43   :  { %279 = vmatprep.subr.bf16.mxu0 %v656_v6  ;;  %v691_v32 = vld [vmem:[#allocation5 + $0xe0] ss:$8 sps:$4 sm:$0xff]   ;;  %v692_v33 = vld [vmem:[#allocation5 + $0xf4] ss:$8 sps:$4 sm:$0xff]   ;;  %v694_v34 = vld [vmem:[#allocation5 + $0xf0] ss:$8 sps:$4 sm:$0xff]  }
  0x44   :  { %v65_v36 = vld [vmem:[#allocation2 + $0x10] sm:$0xff]  ;;  %v105_v40 = vsub.s32 0, %v104_v39  ;;  %v101_v41 = vld [vmem:[%s939_s2] sm:$0x3]  ;;  %v109_v42 = vsub.s32 1, %v104_v39  ;;  %v697_v63 = vld [vmem:[#allocation7 + $0x48] sm:$0xff]  }
  0x45   :  { %v67_v37 = vpack.c.bf16 %v65_v36, %v63_v35  ;;  %v695_v61 = vld [vmem:[#allocation7 + $0x40] sm:$0xff]   ;;  %v698_v0 = vld [vmem:[#allocation7 + $0x8] sm:$0xff]   ;;  %v699_v1 = vld [vmem:[#allocation7 + $0x50] sm:$0xff]   ;;  %s553_s13 = sshll.u32 %s822_s12, 4  ;;  %s554_s13 = int_to_ptr.vmem [resolvable:$true] %s553_s13 }
  0x46   :  { %280 = vmatpush1.bf16.msra.mxu0 %v658_v7  ;;  %v106_v43 = vrot.slane %v101_v41, %v105_v40  ;;  %v110_v44 = vrot.slane %v101_v41, %v109_v42  ;;  %v696_v62 = vld [vmem:[#allocation7] sm:$0xff]   ;;  %615 = vmatprep.subr.bf16.mxu1 %v695_v61  ;;  %v700_v2 = vld [vmem:[#allocation7 + $0x10] sm:$0xff]   ;;  %v701_v3 = vld [vmem:[#allocation7 + $0x58] sm:$0xff]   ;;  %s785_s14 = scalar_lea.vmem %s554_s13, 256  ;;  %p790_p11 = scmp.lt.s32.totalorder %s554_s13, %s554_s13 }
  0x47   :  { %281 = vmatprep.subr.bf16.mxu0 %v659_v8  ;;  %616 = vmatpush3.bf16.msra.mxu1 %v696_v62  ;;  %v702_v4 = vld [vmem:[#allocation7 + $0x18] sm:$0xff]   ;;  %v703_v5 = vld [vmem:[#allocation7 + $0x60] sm:$0xff]   ;;  %v705_v7 = vld [vmem:[#allocation7 + $0x68] sm:$0xff]   ;;  %p786_p10 = scmp.ne.s32.totalorder %s554_s13, %s785_s14  ;;  %p791_p12 = scmp.lt.s32.totalorder %s785_s14, %s785_s14 }
  0x48   :  { %617 = vmatprep.subr.bf16.mxu1 %v697_v63  ;;  %v704_v6 = vld [vmem:[#allocation7 + $0x20] sm:$0xff]   ;;  %v706_v8 = vld [vmem:[#allocation7 + $0x28] sm:$0xff]  }
  0x49   :  { %p792_p13 = por %p791_p12, %p790_p11 }
  0x4a   :  { %282 = vmatpush1.bf16.msra.mxu0 %v661_v9  ;;  %v707_v9 = vld [vmem:[#allocation7 + $0x70] sm:$0xff]  }
  0x4b   :  { %283 = vmatprep.subr.bf16.mxu0 %v662_v10  ;;  %618 = vmatpush3.bf16.msra.mxu1 %v698_v0  ;;  %v708_v10 = vld [vmem:[#allocation7 + $0x30] sm:$0xff]   ;;  %p793_p0 = pnand %p792_p13, %p786_p10 }
  0x4c   :  { %619 = vmatprep.subr.bf16.mxu1 %v699_v1 }
  0x4e   :  { %284 = vmatpush1.bf16.msra.mxu0 %v664_v11  ;;  %v709_v11 = vld [vmem:[#allocation7 + $0x78] sm:$0xff]  }
  0x4f   :  { %285 = vmatprep.subr.bf16.mxu0 %v665_v12  ;;  %620 = vmatpush3.bf16.msra.mxu1 %v700_v2  ;;  %v710_v12 = vld [vmem:[#allocation7 + $0x38] sm:$0xff]  }
  0x50   :  { %621 = vmatprep.subr.bf16.mxu1 %v701_v3 }
  0x52   :  { %286 = vmatpush1.bf16.msra.mxu0 %v667_v15 }
  0x53   :  { %287 = vmatprep.subr.bf16.mxu0 %v668_v16  ;;  %622 = vmatpush3.bf16.msra.mxu1 %v702_v4 }
  0x54   :  { %623 = vmatprep.subr.bf16.mxu1 %v703_v5 }
  0x56   :  { %288 = vmatpush1.bf16.msra.mxu0 %v670_v18 }
  0x57   :  { %289 = vmatprep.subr.bf16.mxu0 %v671_v19  ;;  %624 = vmatpush3.bf16.msra.mxu1 %v704_v6 }
  0x58   :  { %625 = vmatprep.subr.bf16.mxu1 %v705_v7 }
  0x5a   :  { %290 = vmatpush1.bf16.msra.mxu0 %v673_v20 }
  0x5b   :  { %291 = vmatprep.subr.bf16.mxu0 %v674_v21  ;;  %626 = vmatpush3.bf16.msra.mxu1 %v706_v8 }
  0x5c   :  { %627 = vmatprep.subr.bf16.mxu1 %v707_v9 }
  0x5e   :  { %292 = vmatpush1.bf16.msra.mxu0 %v676_v22 }
  0x5f   :  { %293 = vmatprep.subr.bf16.mxu0 %v677_v23  ;;  %628 = vmatpush3.bf16.msra.mxu1 %v708_v10 }
  0x60   :  { %629 = vmatprep.subr.bf16.mxu1 %v709_v11 }
  0x62   :  { %294 = vmatpush1.bf16.msra.mxu0 %v679_v24 }
  0x63   :  { %295 = vmatprep.subr.bf16.mxu0 %v680_v25  ;;  %630 = vmatpush3.bf16.msra.mxu1 %v710_v12 }
  0x66   :  { %296 = vmatpush1.bf16.msra.mxu0 %v682_v26 }
  0x67   :  { %297 = vmatprep.subr.bf16.mxu0 %v683_v27 }
  0x6a   :  { %298 = vmatpush1.bf16.msra.mxu0 %v685_v28 }
  0x6b   :  { %299 = vmatprep.subr.bf16.mxu0 %v686_v29 }
  0x6e   :  { %300 = vmatpush1.bf16.msra.mxu0 %v688_v30 }
  0x6f   :  { %301 = vmatprep.subr.bf16.mxu0 %v689_v31 }
  0x72   :  { %302 = vmatpush1.bf16.msra.mxu0 %v691_v32 }
  0x73   :  { %303 = vmatprep.subr.bf16.mxu0 %v692_v33 }
  0x76   :  { %304 = vmatpush1.bf16.msra.mxu0 %v694_v34 }
  0x79   :  { %306 = vmatmul.mubr.bf16.vlgmr.msra.gmra.mrb[0].mxu0 %v67_v37 }
 0x14c   :  { %v307_v45 = vpop.f32.mrb[0].mxu0 }
 0x14d   :  { %v895_v46 = vadd.f32 %v307_v45, %v106_v43  ;;  %v309_v47 = vpop.f32.mrb[1].mxu0 }
 0x14e   :  { %v897_v48 = vadd.f32 %v309_v47, %v110_v44  ;;  %v311_v49 = vpop.f32.mrb[2].mxu0 }
 0x14f   :  { %v899_v50 = vadd.f32 %v311_v49, %v106_v43  ;;  %v313_v51 = vpop.f32.mrb[3].mxu0  ;;  %v322_v52 = vmul.f32 %v895_v46, %v895_v46 }
 0x150   :  { %v903_v53 = vadd.f32 %v313_v51, %v110_v44  ;;  %v316_v54 = vadd.f32 %v897_v48, %v895_v46  ;;  %v323_v55 = vmul.f32 %v897_v48, %v897_v48 }
 0x151   :  { %v324_v57 = vmul.f32 %v899_v50, %v899_v50 }
 0x152   :  { %317 = vadd.xlane.f32.xlu0 %v316_v54  ;;  %v326_v56 = vadd.f32 %v323_v55, %v322_v52  ;;  %v325_v58 = vmul.f32 %v903_v53, %v903_v53  ;;  %v319_v59 = vadd.f32 %v903_v53, %v899_v50 }
 0x154   :  { %327 = vadd.xlane.f32.xlu1 %v326_v56  ;;  %v329_v60 = vadd.f32 %v325_v58, %v324_v57 }
 0x156   :  { %320 = vadd.xlane.f32.xlu0 %v319_v59 }
 0x158   :  { %330 = vadd.xlane.f32.xlu1 %v329_v60 }
 0x1df   :  { %v318_v13 = vpop.xlane.xlu0 %317 }
 0x1e0   :  { %v332_v14 = vmul.f32 0.00390625, %v318_v13 }
 0x1e1   :  { %v328_v15 = vpop.xlane.xlu1 %327 }
 0x1e2   :  { %v334_v16 = vmul.f32 %v332_v14, %v318_v13  ;;  %v360_v40 = vsub.f32 %v895_v46, %v332_v14  ;;  %v361_v42 = vsub.f32 %v897_v48, %v332_v14  ;;  %v598_v46 = vld [vmem:[%s941_s4] ss:$0 sm:$0xff] }
 0x1e3   :  { %v321_v17 = vpop.xlane.xlu0 %320 }
 0x1e4   :  { %v336_v18 = vsub.f32 %v328_v15, %v334_v16  ;;  %v333_v19 = vmul.f32 0.00390625, %v321_v17 }
 0x1e5   :  { %v331_v22 = vpop.xlane.xlu1 %330 }
 0x1e6   :  { %v338_v20 = vmax.f32 %v336_v18, 0.0  ;;  %v335_v21 = vmul.f32 %v333_v19, %v321_v17  ;;  %v362_v41 = vsub.f32 %v899_v50, %v333_v19  ;;  %v363_v43 = vsub.f32 %v903_v53, %v333_v19 }
 0x1e8   :  { %v340_v23 = vmul.f32 0.003921569, %v338_v20  ;;  %v337_v24 = vsub.f32 %v331_v22, %v335_v21 }
 0x1ea   :  { %711 = vrsqrt.f32 %v340_v23  ;;  %v339_v25 = vmax.f32 %v337_v24, 0.0  ;;  %vm344_vm0 = vcmp.eq.f32.partialorder %v340_v23, inf  ;;  %v347_v29 = vand.u32 2147483648, %v340_v23 }
 0x1eb   :  { %vm346_vm1 = vcmp.eq.f32.partialorder %v340_v23, 0.0 }
 0x1ec   :  { %v341_v26 = vmul.f32 0.003921569, %v339_v25 }
 0x1ee   :  { %713 = vrsqrt.f32 %v341_v26  ;;  %vm351_vm2 = vcmp.eq.f32.partialorder %v341_v26, inf  ;;  %v354_v35 = vand.u32 2147483648, %v341_v26  ;;  %vm353_vm3 = vcmp.eq.f32.partialorder %v341_v26, 0.0 }
 0x1f4   :  { %v712_v27 = vpop.eup %711 }
 0x1f5   :  { %v343_v28 = vmul.f32 %v712_v27, %v340_v23 }
 0x1f7   :  { %v345_v30 = vsel %vm344_vm0, %v340_v23, %v343_v28 }
 0x1f8   :  { %v714_v31 = vpop.eup %713  ;;  %v348_v32 = vsel %vm346_vm1, %v347_v29, %v345_v30 }
 0x1f9   :  { %v350_v33 = vmul.f32 %v714_v31, %v341_v26  ;;  %v356_v34 = vadd.f32 1e-06, %v348_v32 }
 0x1fb   :  { %v352_v36 = vsel %vm351_vm2, %v341_v26, %v350_v33  ;;  %715 = vrcp.f32 %v356_v34 }
 0x1fc   :  { %v355_v37 = vsel %vm353_vm3, %v354_v35, %v352_v36 }
 0x1fd   :  { %v357_v38 = vadd.f32 1e-06, %v355_v37 }
 0x1ff   :  { %717 = vrcp.f32 %v357_v38 }
 0x205   :  { %v716_v39 = vpop.eup %715 }
 0x206   :  { %v365_v45 = vmul.f32 %v716_v39, %v361_v42  ;;  %v364_v49 = vmul.f32 %v716_v39, %v360_v40 }
 0x209   :  { %v718_v44 = vpop.eup %717 }
 0x20a   :  { %v367_v47 = vmul.f32 %v718_v44, %v363_v43  ;;  %v366_v51 = vmul.f32 %v718_v44, %v362_v41 }
 0x20c   :  { %v369_v52 = vpack.c.bf16 %v367_v47, %v365_v45  ;;  %v368_v54 = vpack.c.bf16 %v366_v51, %v364_v49 }
 0x20e   :  { %537 = vmatprep.mubr.bf16.mxu1 %v369_v52 }
 0x20f   :  { %538 = vmatmul.mubr.bf16.vlgmr.msra.gmra.mrb[0].mxu1 %v368_v54 }
 0x2e2   :  { %v631_v55 = vpop.f32.mrb[0].mxu1 }
 0x2e3   :  { %v632_v56 = vpop.f32.mrb[1].mxu1 }
 0x2e4   :  { %v633_v50 = vadd.f32 %v632_v56, %v631_v55  ;;  %v634_v57 = vpop.f32.mrb[2].mxu1 }
 0x2e5   :  { %v635_v48 = vpop.f32.mrb[3].mxu1 }
 0x2e6   :  { %v540_v53 = vadd.f32 %v633_v50, %v598_v46  ;;  %v636_v58 = vadd.f32 %v635_v48, %v634_v57 }
 0x2e8   :  { %546 = vst [vmem:[#allocation8] sm:$0xff] %v540_v53  ;;  %v543_v59 = vadd.f32 %v636_v58, %v598_v46 }
 0x2ea   :  { %547 = vst [vmem:[#allocation8 + $0x8] sm:$0xff] %v543_v59 }
 0x2eb   :  { %796 = shalt.err (!%p793_p0)
}
 0x2ec   :  { %s797_s16 = scalar_lea.hbm %s942_s5, 256 }
 0x2ed   :  { %p798_p1 = scmp.ne.s32.totalorder %s942_s5, %s797_s16  ;;  %p801_p2 = scmp.lt.u32.totalorder %s797_s16, %s942_s5 }
 0x2ef   :  { %p803_p3 = pnand %p801_p2, %p798_p1 }
 0x2f1   :  { %806 = shalt.err (!%p803_p3)
}
 0x2f2   :  { %559 = dma.vmem_to_hbm [thread:$0]  %s554_s13, 256, %s942_s5, [#allocation4], %s814_s28, %s814_s28, %s815_s29  }
 0x2f3   :  { %811 = dma.done.wait [#allocation4], 256  }
 0x2f4   :  { %812 = vsyncadd [#allocation4], 4294967040 }
 0x2f5   :  { %563 = vsyncpa [#allocation3], 1 }
 0x2f6   :  { %564 = vsyncpa [#allocation6], 1 }
 0x2f7   :  { %565 = vsyncpa [#allocation4], 1 }

// kernel: tpu_custom_call.1
= control target key start
LH: loop header
LB: loop body
LE: loop exit
PB: predicated region body
PF: predicated region fallthrough
CT: control target
= control target key end

     0   :  { %10 = vsyncpa [#allocation3], 0  ;;  %s937_s0 = inlined_call_operand.hbm [shape: f32[16,256], index: 0, kind: input, shape index: {}]   ;;  %s938_s1 = inlined_call_operand.hbm [shape: bf16[256,256], index: 1, kind: input, shape index: {}]   ;;  %s939_s2 = inlined_call_operand.vmem [shape: f32[1,256], index: 2, kind: input, shape index: {}]   ;;  %s940_s3 = inlined_call_operand.hbm [shape: bf16[256,128], index: 3, kind: input, shape index: {}]   ;;  %s941_s4 = inlined_call_operand.vmem [shape: f32[1,128], index: 4, kind: input, shape index: {}]   ;;  %s942_s5 = inlined_call_operand.hbm [shape: f32[16,128], index: 5, kind: output, shape index: {}]  }
   0x1   :  { %11 = vsyncpa [#allocation6], 0 }
   0x2   :  { %12 = vsyncpa [#allocation4], 0  ;;  %s813_s18 = smov [#allocation5]   ;;  %s719_s22 = scalar_lea.hbm %s938_s1, 4096 }
   0x3   :  { %s30_s19 = sshll.u32 %s813_s18, 4  ;;  %p720_p0 = scmp.ne.s32.totalorder %s938_s1, %s719_s22  ;;  %s31_s19 = int_to_ptr.vmem [resolvable:$true] %s30_s19 }
   0x4   :  { %p723_p1 = scmp.lt.u32.totalorder %s719_s22, %s938_s1 }
   0x6   :  { %p725_p2 = pnand %p723_p1, %p720_p0 }
   0x8   :  { %728 = shalt.err (!%p725_p2)
}
   0x9   :  { %s729_s27 = scalar_lea.vmem %s31_s19, 4096  ;;  %p734_p4 = scmp.lt.s32.totalorder %s31_s19, %s31_s19 }
   0xa   :  { %p730_p3 = scmp.ne.s32.totalorder %s31_s19, %s729_s27  ;;  %p735_p5 = scmp.lt.s32.totalorder %s729_s27, %s729_s27 }
   0xc   :  { %p736_p6 = por %p735_p5, %p734_p4 }
   0xe   :  { %p737_p7 = pnand %p736_p6, %p730_p3 }
  0x10   :  { %740 = shalt.err (!%p737_p7)
}
  0x11   :  { %s814_s28 = smov 128   ;;  %s815_s29 = smov 8  }
  0x12   :  { %36 = dma.hbm_to_vmem [thread:$0]  %s938_s1, 4096, %s31_s19, [#allocation6], %s814_s28, %s814_s28, %s815_s29  }
  0x13   :  { %s816_s7 = smov [#allocation2]   ;;  %s741_s11 = scalar_lea.hbm %s937_s0, 512 }
  0x14   :  { %s18_s8 = sshll.u32 %s816_s7, 4  ;;  %p742_p8 = scmp.ne.s32.totalorder %s937_s0, %s741_s11  ;;  %s19_s8 = int_to_ptr.vmem [resolvable:$true] %s18_s8 }
  0x15   :  { %p745_p9 = scmp.lt.u32.totalorder %s741_s11, %s937_s0 }
  0x17   :  { %p747_p10 = pnand %p745_p9, %p742_p8 }
  0x19   :  { %750 = shalt.err (!%p747_p10)
}
  0x1a   :  { %s751_s16 = scalar_lea.vmem %s19_s8, 512  ;;  %p756_p12 = scmp.lt.s32.totalorder %s19_s8, %s19_s8 }
  0x1b   :  { %p752_p11 = scmp.ne.s32.totalorder %s19_s8, %s751_s16  ;;  %p757_p13 = scmp.lt.s32.totalorder %s751_s16, %s751_s16 }
  0x1d   :  { %p758_p0 = por %p757_p13, %p756_p12 }
  0x1f   :  { %p759_p1 = pnand %p758_p0, %p752_p11 }
  0x21   :  { %762 = shalt.err (!%p759_p1)
}
  0x22   :  { %s817_s1 = smov 256   ;;  %s818_s17 = smov 16  }
  0x23   :  { %24 = dma.hbm_to_vmem [thread:$0]  %s937_s0, 512, %s19_s8, [#allocation3], %s817_s1, %s817_s1, %s818_s17  }
  0x24   :  { %s819_s20 = smov [#allocation7]   ;;  %s763_s24 = scalar_lea.hbm %s940_s3, 2048 }
  0x25   :  { %s44_s21 = sshll.u32 %s819_s20, 4  ;;  %p764_p2 = scmp.ne.s32.totalorder %s940_s3, %s763_s24  ;;  %s45_s21 = int_to_ptr.vmem [resolvable:$true] %s44_s21 }
  0x26   :  { %p767_p3 = scmp.lt.u32.totalorder %s763_s24, %s940_s3 }
  0x28   :  { %p769_p4 = pnand %p767_p3, %p764_p2 }
  0x2a   :  { %772 = shalt.err (!%p769_p4)
}
  0x2b   :  { %s773_s6 = scalar_lea.vmem %s45_s21, 2048  ;;  %p778_p6 = scmp.lt.s32.totalorder %s45_s21, %s45_s21 }
  0x2c   :  { %p774_p5 = scmp.ne.s32.totalorder %s45_s21, %s773_s6  ;;  %p779_p7 = scmp.lt.s32.totalorder %s773_s6, %s773_s6 }
  0x2e   :  { %p780_p8 = por %p779_p7, %p778_p6 }
  0x30   :  { %p781_p9 = pnand %p780_p8, %p774_p5 }
  0x32   :  { %784 = shalt.err (!%p781_p9)
}
  0x33   :  { %s820_s0 = smov 64   ;;  %s821_s7 = smov 4  }
  0x34   :  { %50 = dma.hbm_to_vmem [thread:$0]  %s940_s3, 2048, %s45_s21, [#allocation6], %s820_s0, %s820_s0, %s821_s7  }
  0x35   :  { %807 = dma.done.wait [#allocation3], 512  }
  0x36   :  { %808 = vsyncadd [#allocation3], 4294966784 }
  0x37   :  { %809 = dma.done.wait [#allocation6], 6144  }
  0x38   :  { %810 = vsyncadd [#allocation6], 4294961152  ;;  %v647_v0 = vld [vmem:[#allocation5 + $0x4] ss:$8 sps:$4 sm:$0xff]   ;;  %v649_v1 = vld [vmem:[#allocation5] ss:$8 sps:$4 sm:$0xff]   ;;  %v103_v38 = vlaneseq }
  0x39   :  { %273 = vmatprep.subr.bf16.mxu0 %v647_v0  ;;  %v650_v2 = vld [vmem:[#allocation5 + $0x14] ss:$8 sps:$4 sm:$0xff]   ;;  %v652_v3 = vld [vmem:[#allocation5 + $0x10] ss:$8 sps:$4 sm:$0xff]   ;;  %v653_v4 = vld [vmem:[#allocation5 + $0x24] ss:$8 sps:$4 sm:$0xff]  }
  0x3a   :  { %274 = vmatpush1.bf16.msra.mxu0 %v649_v1  ;;  %v655_v5 = vld [vmem:[#allocation5 + $0x20] ss:$8 sps:$4 sm:$0xff]   ;;  %v656_v6 = vld [vmem:[#allocation5 + $0x34] ss:$8 sps:$4 sm:$0xff]   ;;  %v658_v7 = vld [vmem:[#allocation5 + $0x30] ss:$8 sps:$4 sm:$0xff]  }
  0x3b   :  { %275 = vmatprep.subr.bf16.mxu0 %v650_v2  ;;  %v659_v8 = vld [vmem:[#allocation5 + $0x44] ss:$8 sps:$4 sm:$0xff]   ;;  %v661_v9 = vld [vmem:[#allocation5 + $0x40] ss:$8 sps:$4 sm:$0xff]   ;;  %v662_v10 = vld [vmem:[#allocation5 + $0x54] ss:$8 sps:$4 sm:$0xff]  }
  0x3c   :  { %v664_v11 = vld [vmem:[#allocation5 + $0x50] ss:$8 sps:$4 sm:$0xff]   ;;  %v665_v12 = vld [vmem:[#allocation5 + $0x64] ss:$8 sps:$4 sm:$0xff]   ;;  %v667_v15 = vld [vmem:[#allocation5 + $0x60] ss:$8 sps:$4 sm:$0xff]  }
  0x3d   :  { %v64_v13 = vld [vmem:[#allocation2 + $0x8] sm:$0xff]  ;;  %v66_v14 = vld [vmem:[#allocation2 + $0x18] sm:$0xff]  ;;  %v63_v35 = vld [vmem:[#allocation2] sm:$0xff]  ;;  %v104_v39 = vshrl.u32 %v103_v38, 7  ;;  %s822_s12 = smov [#allocation8]  }
  0x3e   :  { %276 = vmatpush1.bf16.msra.mxu0 %v652_v3  ;;  %v668_v16 = vld [vmem:[#allocation5 + $0x74] ss:$8 sps:$4 sm:$0xff]   ;;  %v68_v17 = vpack.c.bf16 %v66_v14, %v64_v13  ;;  %v670_v18 = vld [vmem:[#allocation5 + $0x70] ss:$8 sps:$4 sm:$0xff]   ;;  %v671_v19 = vld [vmem:[#allocation5 + $0x84] ss:$8 sps:$4 sm:$0xff]  }
  0x3f   :  { %277 = vmatprep.subr.bf16.mxu0 %v653_v4  ;;  %v673_v20 = vld [vmem:[#allocation5 + $0x80] ss:$8 sps:$4 sm:$0xff]   ;;  %v674_v21 = vld [vmem:[#allocation5 + $0x94] ss:$8 sps:$4 sm:$0xff]   ;;  %v676_v22 = vld [vmem:[#allocation5 + $0x90] ss:$8 sps:$4 sm:$0xff]  }
  0x40   :  { %305 = vmatprep.mubr.bf16.mxu0 %v68_v17  ;;  %v677_v23 = vld [vmem:[#allocation5 + $0xa4] ss:$8 sps:$4 sm:$0xff]   ;;  %v679_v24 = vld [vmem:[#allocation5 + $0xa0] ss:$8 sps:$4 sm:$0xff]   ;;  %v680_v25 = vld [vmem:[#allocation5 + $0xb4] ss:$8 sps:$4 sm:$0xff]  }
  0x41   :  { %v682_v26 = vld [vmem:[#allocation5 + $0xb0] ss:$8 sps:$4 sm:$0xff]   ;;  %v683_v27 = vld [vmem:[#allocation5 + $0xc4] ss:$8 sps:$4 sm:$0xff]   ;;  %v685_v28 = vld [vmem:[#allocation5 + $0xc0] ss:$8 sps:$4 sm:$0xff]  }
  0x42   :  { %278 = vmatpush1.bf16.msra.mxu0 %v655_v5  ;;  %v686_v29 = vld [vmem:[#allocation5 + $0xd4] ss:$8 sps:$4 sm:$0xff]   ;;  %v688_v30 = vld [vmem:[#allocation5 + $0xd0] ss:$8 sps:$4 sm:$0xff]   ;;  %v689_v31 = vld [vmem:[#allocation5 + $0xe4] ss:$8 sps:$4 sm:$0xff]  }
  0x43   :  { %279 = vmatprep.subr.bf16.mxu0 %v656_v6  ;;  %v691_v32 = vld [vmem:[#allocation5 + $0xe0] ss:$8 sps:$4 sm:$0xff]   ;;  %v692_v33 = vld [vmem:[#allocation5 + $0xf4] ss:$8 sps:$4 sm:$0xff]   ;;  %v694_v34 = vld [vmem:[#allocation5 + $0xf0] ss:$8 sps:$4 sm:$0xff]  }
  0x44   :  { %v65_v36 = vld [vmem:[#allocation2 + $0x10] sm:$0xff]  ;;  %v105_v40 = vsub.s32 0, %v104_v39  ;;  %v101_v41 = vld [vmem:[%s939_s2] sm:$0x3]  ;;  %v109_v42 = vsub.s32 1, %v104_v39  ;;  %v697_v63 = vld [vmem:[#allocation7 + $0x48] sm:$0xff]  }
  0x45   :  { %v67_v37 = vpack.c.bf16 %v65_v36, %v63_v35  ;;  %v695_v61 = vld [vmem:[#allocation7 + $0x40] sm:$0xff]   ;;  %v698_v0 = vld [vmem:[#allocation7 + $0x8] sm:$0xff]   ;;  %v699_v1 = vld [vmem:[#allocation7 + $0x50] sm:$0xff]   ;;  %s553_s13 = sshll.u32 %s822_s12, 4  ;;  %s554_s13 = int_to_ptr.vmem [resolvable:$true] %s553_s13 }
  0x46   :  { %280 = vmatpush1.bf16.msra.mxu0 %v658_v7  ;;  %v106_v43 = vrot.slane %v101_v41, %v105_v40  ;;  %v110_v44 = vrot.slane %v101_v41, %v109_v42  ;;  %v696_v62 = vld [vmem:[#allocation7] sm:$0xff]   ;;  %615 = vmatprep.subr.bf16.mxu1 %v695_v61  ;;  %v700_v2 = vld [vmem:[#allocation7 + $0x10] sm:$0xff]   ;;  %v701_v3 = vld [vmem:[#allocation7 + $0x58] sm:$0xff]   ;;  %s785_s14 = scalar_lea.vmem %s554_s13, 256  ;;  %p790_p11 = scmp.lt.s32.totalorder %s554_s13, %s554_s13 }
  0x47   :  { %281 = vmatprep.subr.bf16.mxu0 %v659_v8  ;;  %616 = vmatpush3.bf16.msra.mxu1 %v696_v62  ;;  %v702_v4 = vld [vmem:[#allocation7 + $0x18] sm:$0xff]   ;;  %v703_v5 = vld [vmem:[#allocation7 + $0x60] sm:$0xff]   ;;  %v705_v7 = vld [vmem:[#allocation7 + $0x68] sm:$0xff]   ;;  %p786_p10 = scmp.ne.s32.totalorder %s554_s13, %s785_s14  ;;  %p791_p12 = scmp.lt.s32.totalorder %s785_s14, %s785_s14 }
  0x48   :  { %617 = vmatprep.subr.bf16.mxu1 %v697_v63  ;;  %v704_v6 = vld [vmem:[#allocation7 + $0x20] sm:$0xff]   ;;  %v706_v8 = vld [vmem:[#allocation7 + $0x28] sm:$0xff]  }
  0x49   :  { %p792_p13 = por %p791_p12, %p790_p11 }
  0x4a   :  { %282 = vmatpush1.bf16.msra.mxu0 %v661_v9  ;;  %v707_v9 = vld [vmem:[#allocation7 + $0x70] sm:$0xff]  }
  0x4b   :  { %283 = vmatprep.subr.bf16.mxu0 %v662_v10  ;;  %618 = vmatpush3.bf16.msra.mxu1 %v698_v0  ;;  %v708_v10 = vld [vmem:[#allocation7 + $0x30] sm:$0xff]   ;;  %p793_p0 = pnand %p792_p13, %p786_p10 }
  0x4c   :  { %619 = vmatprep.subr.bf16.mxu1 %v699_v1 }
  0x4e   :  { %284 = vmatpush1.bf16.msra.mxu0 %v664_v11  ;;  %v709_v11 = vld [vmem:[#allocation7 + $0x78] sm:$0xff]  }
  0x4f   :  { %285 = vmatprep.subr.bf16.mxu0 %v665_v12  ;;  %620 = vmatpush3.bf16.msra.mxu1 %v700_v2  ;;  %v710_v12 = vld [vmem:[#allocation7 + $0x38] sm:$0xff]  }
  0x50   :  { %621 = vmatprep.subr.bf16.mxu1 %v701_v3 }
  0x52   :  { %286 = vmatpush1.bf16.msra.mxu0 %v667_v15 }
  0x53   :  { %287 = vmatprep.subr.bf16.mxu0 %v668_v16  ;;  %622 = vmatpush3.bf16.msra.mxu1 %v702_v4 }
  0x54   :  { %623 = vmatprep.subr.bf16.mxu1 %v703_v5 }
  0x56   :  { %288 = vmatpush1.bf16.msra.mxu0 %v670_v18 }
  0x57   :  { %289 = vmatprep.subr.bf16.mxu0 %v671_v19  ;;  %624 = vmatpush3.bf16.msra.mxu1 %v704_v6 }
  0x58   :  { %625 = vmatprep.subr.bf16.mxu1 %v705_v7 }
  0x5a   :  { %290 = vmatpush1.bf16.msra.mxu0 %v673_v20 }
  0x5b   :  { %291 = vmatprep.subr.bf16.mxu0 %v674_v21  ;;  %626 = vmatpush3.bf16.msra.mxu1 %v706_v8 }
  0x5c   :  { %627 = vmatprep.subr.bf16.mxu1 %v707_v9 }
  0x5e   :  { %292 = vmatpush1.bf16.msra.mxu0 %v676_v22 }
  0x5f   :  { %293 = vmatprep.subr.bf16.mxu0 %v677_v23  ;;  %628 = vmatpush3.bf16.msra.mxu1 %v708_v10 }
  0x60   :  { %629 = vmatprep.subr.bf16.mxu1 %v709_v11 }
  0x62   :  { %294 = vmatpush1.bf16.msra.mxu0 %v679_v24 }
  0x63   :  { %295 = vmatprep.subr.bf16.mxu0 %v680_v25  ;;  %630 = vmatpush3.bf16.msra.mxu1 %v710_v12 }
  0x66   :  { %296 = vmatpush1.bf16.msra.mxu0 %v682_v26 }
  0x67   :  { %297 = vmatprep.subr.bf16.mxu0 %v683_v27 }
  0x6a   :  { %298 = vmatpush1.bf16.msra.mxu0 %v685_v28 }
  0x6b   :  { %299 = vmatprep.subr.bf16.mxu0 %v686_v29 }
  0x6e   :  { %300 = vmatpush1.bf16.msra.mxu0 %v688_v30 }
  0x6f   :  { %301 = vmatprep.subr.bf16.mxu0 %v689_v31 }
  0x72   :  { %302 = vmatpush1.bf16.msra.mxu0 %v691_v32 }
  0x73   :  { %303 = vmatprep.subr.bf16.mxu0 %v692_v33 }
  0x76   :  { %304 = vmatpush1.bf16.msra.mxu0 %v694_v34 }
  0x79   :  { %306 = vmatmul.mubr.bf16.vlgmr.msra.gmra.mrb[0].mxu0 %v67_v37 }
 0x14c   :  { %v307_v45 = vpop.f32.mrb[0].mxu0 }
 0x14d   :  { %v895_v46 = vadd.f32 %v307_v45, %v106_v43  ;;  %v309_v47 = vpop.f32.mrb[1].mxu0 }
 0x14e   :  { %v897_v48 = vadd.f32 %v309_v47, %v110_v44  ;;  %v311_v49 = vpop.f32.mrb[2].mxu0 }
 0x14f   :  { %v899_v50 = vadd.f32 %v311_v49, %v106_v43  ;;  %v313_v51 = vpop.f32.mrb[3].mxu0  ;;  %v322_v52 = vmul.f32 %v895_v46, %v895_v46 }
 0x150   :  { %v903_v53 = vadd.f32 %v313_v51, %v110_v44  ;;  %v316_v54 = vadd.f32 %v897_v48, %v895_v46  ;;  %v323_v55 = vmul.f32 %v897_v48, %v897_v48 }
 0x151   :  { %v324_v57 = vmul.f32 %v899_v50, %v899_v50 }
 0x152   :  { %317 = vadd.xlane.f32.xlu0 %v316_v54  ;;  %v326_v56 = vadd.f32 %v323_v55, %v322_v52  ;;  %v325_v58 = vmul.f32 %v903_v53, %v903_v53  ;;  %v319_v59 = vadd.f32 %v903_v53, %v899_v50 }
 0x154   :  { %327 = vadd.xlane.f32.xlu1 %v326_v56  ;;  %v329_v60 = vadd.f32 %v325_v58, %v324_v57 }
 0x156   :  { %320 = vadd.xlane.f32.xlu0 %v319_v59 }
 0x158   :  { %330 = vadd.xlane.f32.xlu1 %v329_v60 }
 0x1df   :  { %v318_v13 = vpop.xlane.xlu0 %317 }
 0x1e0   :  { %v332_v14 = vmul.f32 0.00390625, %v318_v13 }
 0x1e1   :  { %v328_v15 = vpop.xlane.xlu1 %327 }
 0x1e2   :  { %v334_v16 = vmul.f32 %v332_v14, %v318_v13  ;;  %v360_v40 = vsub.f32 %v895_v46, %v332_v14  ;;  %v361_v42 = vsub.f32 %v897_v48, %v332_v14  ;;  %v598_v46 = vld [vmem:[%s941_s4] ss:$0 sm:$0xff] }
 0x1e3   :  { %v321_v17 = vpop.xlane.xlu0 %320 }
 0x1e4   :  { %v336_v18 = vsub.f32 %v328_v15, %v334_v16  ;;  %v333_v19 = vmul.f32 0.00390625, %v321_v17 }
 0x1e5   :  { %v331_v22 = vpop.xlane.xlu1 %330 }
 0x1e6   :  { %v338_v20 = vmax.f32 %v336_v18, 0.0  ;;  %v335_v21 = vmul.f32 %v333_v19, %v321_v17  ;;  %v362_v41 = vsub.f32 %v899_v50, %v333_v19  ;;  %v363_v43 = vsub.f32 %v903_v53, %v333_v19 }
 0x1e8   :  { %v340_v23 = vmul.f32 0.003921569, %v338_v20  ;;  %v337_v24 = vsub.f32 %v331_v22, %v335_v21 }
 0x1ea   :  { %711 = vrsqrt.f32 %v340_v23  ;;  %v339_v25 = vmax.f32 %v337_v24, 0.0  ;;  %vm344_vm0 = vcmp.eq.f32.partialorder %v340_v23, inf  ;;  %v347_v29 = vand.u32 2147483648, %v340_v23 }
 0x1eb   :  { %vm346_vm1 = vcmp.eq.f32.partialorder %v340_v23, 0.0 }
 0x1ec   :  { %v341_v26 = vmul.f32 0.003921569, %v339_v25 }
 0x1ee   :  { %713 = vrsqrt.f32 %v341_v26  ;;  %vm351_vm2 = vcmp.eq.f32.partialorder %v341_v26, inf  ;;  %v354_v35 = vand.u32 2147483648, %v341_v26  ;;  %vm353_vm3 = vcmp.eq.f32.partialorder %v341_v26, 0.0 }
 0x1f4   :  { %v712_v27 = vpop.eup %711 }
 0x1f5   :  { %v343_v28 = vmul.f32 %v712_v27, %v340_v23 }
 0x1f7   :  { %v345_v30 = vsel %vm344_vm0, %v340_v23, %v343_v28 }
 0x1f8   :  { %v714_v31 = vpop.eup %713  ;;  %v348_v32 = vsel %vm346_vm1, %v347_v29, %v345_v30 }
 0x1f9   :  { %v350_v33 = vmul.f32 %v714_v31, %v341_v26  ;;  %v356_v34 = vadd.f32 1e-06, %v348_v32 }
 0x1fb   :  { %v352_v36 = vsel %vm351_vm2, %v341_v26, %v350_v33  ;;  %715 = vrcp.f32 %v356_v34 }
 0x1fc   :  { %v355_v37 = vsel %vm353_vm3, %v354_v35, %v352_v36 }
 0x1fd   :  { %v357_v38 = vadd.f32 1e-06, %v355_v37 }
 0x1ff   :  { %717 = vrcp.f32 %v357_v38 }
 0x205   :  { %v716_v39 = vpop.eup %715 }
 0x206   :  { %v365_v45 = vmul.f32 %v716_v39, %v361_v42  ;;  %v364_v49 = vmul.f32 %v716_v39, %v360_v40 }
 0x209   :  { %v718_v44 = vpop.eup %717 }
 0x20a   :  { %v367_v47 = vmul.f32 %v718_v44, %v363_v43  ;;  %v366_v51 = vmul.f32 %v718_v44, %v362_v41 }
 0x20c   :  { %v369_v52 = vpack.c.bf16 %v367_v47, %v365_v45  ;;  %v368_v54 = vpack.c.bf16 %v366_v51, %v364_v49 }
 0x20e   :  { %537 = vmatprep.mubr.bf16.mxu1 %v369_v52 }
 0x20f   :  { %538 = vmatmul.mubr.bf16.vlgmr.msra.gmra.mrb[0].mxu1 %v368_v54 }
 0x2e2   :  { %v631_v55 = vpop.f32.mrb[0].mxu1 }
 0x2e3   :  { %v632_v56 = vpop.f32.mrb[1].mxu1 }
 0x2e4   :  { %v633_v50 = vadd.f32 %v632_v56, %v631_v55  ;;  %v634_v57 = vpop.f32.mrb[2].mxu1 }
 0x2e5   :  { %v635_v48 = vpop.f32.mrb[3].mxu1 }
 0x2e6   :  { %v540_v53 = vadd.f32 %v633_v50, %v598_v46  ;;  %v636_v58 = vadd.f32 %v635_v48, %v634_v57 }
 0x2e8   :  { %546 = vst [vmem:[#allocation8] sm:$0xff] %v540_v53  ;;  %v543_v59 = vadd.f32 %v636_v58, %v598_v46 }
 0x2ea   :  { %547 = vst [vmem:[#allocation8 + $0x8] sm:$0xff] %v543_v59 }
 0x2eb   :  { %796 = shalt.err (!%p793_p0)
}
 0x2ec   :  { %s797_s16 = scalar_lea.hbm %s942_s5, 256 }
 0x2ed   :  { %p798_p1 = scmp.ne.s32.totalorder %s942_s5, %s797_s16  ;;  %p801_p2 = scmp.lt.u32.totalorder %s797_s16, %s942_s5 }
 0x2ef   :  { %p803_p3 = pnand %p801_p2, %p798_p1 }
 0x2f1   :  { %806 = shalt.err (!%p803_p3)
}
 0x2f2   :  { %559 = dma.vmem_to_hbm [thread:$0]  %s554_s13, 256, %s942_s5, [#allocation4], %s814_s28, %s814_s28, %s815_s29  }
 0x2f3   :  { %811 = dma.done.wait [#allocation4], 256  }
 0x2f4   :  { %812 = vsyncadd [#allocation4], 4294967040 }
 0x2f5   :  { %563 = vsyncpa [#allocation3], 1 }
 0x2f6   :  { %564 = vsyncpa [#allocation6], 1 }
 0x2f7   :  { %565 = vsyncpa [#allocation4], 1 }

</bundles_post_ra>
